<compile_context>
chip_gen: v7x
topology: tpu7x:2x2x1
jax: 0.10.0
libtpu: 0.0.40
codegen_flags: <defaults>
</compile_context>

<pallas_src>
import math

import jax
import jax.numpy as jnp
from jax.experimental import pallas as pl
from jax.experimental.pallas import tpu as pltpu

LN_EPS = 1e-5  # PyTorch nn.LayerNorm default
INV_SQRT2 = 1.0 / math.sqrt(2.0)


def unit_kernel(x_ref, w_ref, b_ref, o_ref):
    """Fused LayerNorm(normalize-only) -> Linear(folded affine) -> GELU.

    The LayerNorm affine (gamma, beta) is pre-folded into (w, b) by the
    wrapper, so the kernel only normalizes, matmuls on the MXU, and applies
    GELU. Dropout is the identity in eval mode.
    """
    x = x_ref[...].astype(jnp.float32)                       # (TB, D_in)

    # --- LayerNorm over the feature axis (affine folded into W/b) ---
    mean = jnp.mean(x, axis=-1, keepdims=True)
    centered = x - mean
    var = jnp.mean(centered * centered, axis=-1, keepdims=True)
    xn = centered * jax.lax.rsqrt(var + LN_EPS)

    # --- Linear: (TB, D_in) @ (D_in, D_pad) + (1, D_pad) on the MXU ---
    y = jnp.dot(xn, w_ref[...], preferred_element_type=jnp.float32)
    y = y + b_ref[...]

    # --- GELU (exact erf form, matches torch.nn.GELU default) ---
    y = 0.5 * y * (1.0 + jax.lax.erf(y * INV_SQRT2))

    # --- Dropout: identity in eval mode ---
    # TODO(synk): training-mode dropout (pltpu.prng_random_bits mask) omitted;
    #             eval-mode semantics (identity) are reproduced exactly.
    o_ref[...] = y.astype(o_ref.dtype)


def _round_up(n, m):
    return ((n + m - 1) // m) * m


def unit_forward(x, gamma, beta, w, b, *, block_rows=512):
    """x: (B, D_in); gamma/beta: (1, D_in); w: (D_in, D_out); b: (1, D_out)."""
    B, D_in = x.shape
    D_out = w.shape[1]

    # Fold the LayerNorm affine into the Linear (exact up to FP reorder):
    #   (xn*gamma + beta) @ W + b == xn @ (gamma[:,None]*W) + (beta @ W + b)
    w_f = (gamma.reshape(D_in, 1) * w).astype(jnp.float32)        # (D_in, D_out)
    b_f = (beta @ w + b).astype(jnp.float32)                      # (1, D_out)

    # Lane-dense output: pad D_out up to a multiple of 128 so output stores are
    # unmasked full-vreg vst; padded (zero-W, zero-b) columns are sliced off.
    D_pad = _round_up(D_out, 128)
    if D_pad != D_out:
        w_f = jnp.pad(w_f, ((0, 0), (0, D_pad - D_out)))
        b_f = jnp.pad(b_f, ((0, 0), (0, D_pad - D_out)))

    # Batch tiling: large streamed row blocks, batch padded to whole tiles.
    # VMEM per step at TB=512: x 64 KiB + out 256 KiB (x2 pipeline buffers)
    # -> far below the 32 MiB scoped default on every generation (incl. v7x).
    TB = min(block_rows, _round_up(B, 8))
    B_pad = _round_up(B, TB)
    x_pad = jnp.pad(x, ((0, B_pad - B), (0, 0))) if B_pad != B else x

    out = pl.pallas_call(
        unit_kernel,
        out_shape=jax.ShapeDtypeStruct((B_pad, D_pad), x.dtype),
        grid=(B_pad // TB,),
        in_specs=[
            pl.BlockSpec((TB, D_in), lambda i: (i, 0)),      # streamed x tiles
            pl.BlockSpec((D_in, D_pad), lambda i: (0, 0)),   # VMEM-resident W'
            pl.BlockSpec((1, D_pad), lambda i: (0, 0)),      # VMEM-resident b'
        ],
        out_specs=pl.BlockSpec((TB, D_pad), lambda i: (i, 0)),
        compiler_params=pltpu.CompilerParams(
            dimension_semantics=("parallel",)),              # megacore on v7x
    )(x_pad, w_f, b_f)

    return out[:B, :D_out]


def reference_forward(x, gamma, beta, w, b):
    """Pure-JAX reference mirroring the PyTorch forward (eval mode)."""
    xf = x.astype(jnp.float32)
    mean = jnp.mean(xf, axis=-1, keepdims=True)
    var = jnp.mean((xf - mean) ** 2, axis=-1, keepdims=True)
    xn = (xf - mean) / jnp.sqrt(var + LN_EPS) * gamma + beta
    y = xn @ w + b
    return 0.5 * y * (1.0 + jax.lax.erf(y * INV_SQRT2))


if __name__ == "__main__":
    # Small shapes consistent with the module; B chosen non-multiple of the
    # row tile to exercise the padding + multi-step-grid path.
    B, D_in, D_out = 200, 32, 64

    key = jax.random.PRNGKey(0)
    kx, kg, kb2, kw, kb = jax.random.split(key, 5)

    # Deterministic synthetic parameters (shapes match nn.LayerNorm / nn.Linear).
    x = jax.random.normal(kx, (B, D_in), dtype=jnp.float32)
    gamma = 1.0 + 0.1 * jax.random.normal(kg, (1, D_in), dtype=jnp.float32)
    beta = 0.1 * jax.random.normal(kb2, (1, D_in), dtype=jnp.float32)
    # nn.Linear weight is (out, in); store transposed as (in, out) for the kernel.
    w = (jax.random.normal(kw, (D_out, D_in), dtype=jnp.float32)
         / math.sqrt(D_in)).T
    b = 0.1 * jax.random.normal(kb, (1, D_out), dtype=jnp.float32)

    # Use a small row tile here so the grid has several steps even at B=200.
    out = unit_forward(x, gamma, beta, w, b, block_rows=64)
    out = jax.block_until_ready(out)

    ref = reference_forward(x, gamma, beta, w, b)
    assert out.shape == (B, D_out)
    assert jnp.allclose(out, ref, atol=2e-5, rtol=2e-5), "mismatch vs reference"

    print("KERNEL_OK")
</pallas_src>

<mosaic_0001>
module attributes {stable_mosaic.version = 11 : i64} {
  func.func @unit_kernel(%arg0: i32, %arg1: memref<64x32xf32, #tpu.memory_space<vmem>>, %arg2: memref<32x128xf32, #tpu.memory_space<vmem>>, %arg3: memref<1x128xf32, #tpu.memory_space<vmem>>, %arg4: memref<64x128xf32, #tpu.memory_space<vmem>>) attributes {dimension_semantics = [#tpu.dimension_semantics<parallel>], iteration_bounds = array<i64: 4>, scalar_prefetch = 0 : i64, scratch_operands = 0 : i64, tpu.core_type = #tpu.core_type<tc>, window_params = [{transform_indices = @transform_0, window_bounds = array<i64: 64, 32>}, {pipeline_mode = #tpu.pipeline_mode<synchronous>, transform_indices = @transform_1, window_bounds = array<i64: 32, 128>}, {pipeline_mode = #tpu.pipeline_mode<synchronous>, transform_indices = @transform_2, window_bounds = array<i64: 1, 128>}, {transform_indices = @transform_3, window_bounds = array<i64: 64, 128>}]} {
    %c0 = arith.constant 0 : index
    %c0_0 = arith.constant 0 : index
    %0 = vector.load %arg1[%c0, %c0_0] : memref<64x32xf32, #tpu.memory_space<vmem>>, vector<64x32xf32>
    %cst = arith.constant dense<0.000000e+00> : vector<64xf32>
    %1 = vector.multi_reduction <add>, %0, %cst [1] : vector<64x32xf32> to vector<64xf32>
    %2 = vector.shape_cast %1 : vector<64xf32> to vector<64x1xf32>
    %cst_1 = arith.constant 3.200000e+01 : f32
    %3 = vector.broadcast %cst_1 : f32 to vector<64x1xf32>
    %4 = arith.divf %2, %3 : vector<64x1xf32>
    %5 = vector.broadcast %4 : vector<64x1xf32> to vector<64x32xf32>
    %6 = arith.subf %0, %5 : vector<64x32xf32>
    %7 = arith.mulf %6, %6 : vector<64x32xf32>
    %cst_2 = arith.constant dense<0.000000e+00> : vector<64xf32>
    %8 = vector.multi_reduction <add>, %7, %cst_2 [1] : vector<64x32xf32> to vector<64xf32>
    %9 = vector.shape_cast %8 : vector<64xf32> to vector<64x1xf32>
    %cst_3 = arith.constant 3.200000e+01 : f32
    %10 = vector.broadcast %cst_3 : f32 to vector<64x1xf32>
    %11 = arith.divf %9, %10 : vector<64x1xf32>
    %cst_4 = arith.constant 9.99999974E-6 : f32
    %12 = vector.broadcast %cst_4 : f32 to vector<64x1xf32>
    %13 = arith.addf %11, %12 : vector<64x1xf32>
    %14 = math.rsqrt %13 : vector<64x1xf32>
    %15 = vector.broadcast %14 : vector<64x1xf32> to vector<64x32xf32>
    %16 = arith.mulf %6, %15 : vector<64x32xf32>
    %c0_5 = arith.constant 0 : index
    %c0_6 = arith.constant 0 : index
    %17 = vector.load %arg2[%c0_5, %c0_6] : memref<32x128xf32, #tpu.memory_space<vmem>>, vector<32x128xf32>
    %cst_7 = arith.constant dense<0.000000e+00> : vector<64x128xf32>
    %18 = tpu.matmul %16, %17, %cst_7 {dimension_numbers = #tpu.dot_dimension_numbers<[1], [0], [0], [1], [0, 0, 1, 1], [], []>} : vector<64x32xf32>, vector<32x128xf32>, vector<64x128xf32> -> vector<64x128xf32>
    %c0_8 = arith.constant 0 : index
    %c0_9 = arith.constant 0 : index
    %19 = vector.load %arg3[%c0_8, %c0_9] : memref<1x128xf32, #tpu.memory_space<vmem>>, vector<1x128xf32>
    %20 = vector.broadcast %19 : vector<1x128xf32> to vector<64x128xf32>
    %21 = arith.addf %18, %20 : vector<64x128xf32>
    %cst_10 = arith.constant 5.000000e-01 : f32
    %22 = vector.broadcast %cst_10 : f32 to vector<64x128xf32>
    %23 = arith.mulf %22, %21 : vector<64x128xf32>
    %cst_11 = arith.constant 0.707106769 : f32
    %24 = vector.broadcast %cst_11 : f32 to vector<64x128xf32>
    %25 = arith.mulf %21, %24 : vector<64x128xf32>
    %26 = math.erf %25 : vector<64x128xf32>
    %cst_12 = arith.constant 1.000000e+00 : f32
    %27 = vector.broadcast %cst_12 : f32 to vector<64x128xf32>
    %28 = arith.addf %27, %26 : vector<64x128xf32>
    %29 = arith.mulf %23, %28 : vector<64x128xf32>
    %c0_13 = arith.constant 0 : index
    %c0_14 = arith.constant 0 : index
    %30 = vector.load %arg4[%c0_13, %c0_14] : memref<64x128xf32, #tpu.memory_space<vmem>>, vector<64x128xf32>
    tpu.vector_store %arg4[%c0_13, %c0_14], %29 {strides = array<i32>} : memref<64x128xf32, #tpu.memory_space<vmem>>, vector<64x128xf32>,
    return
  }
  func.func @transform_0(%arg0: i32) -> (i32, i32) {
    %c0_i32 = arith.constant 0 : i32
    %c0_i32_0 = arith.constant 0 : i32
    return %arg0, %c0_i32 : i32, i32
  }
  func.func @transform_1(%arg0: i32) -> (i32, i32) {
    %c0_i32 = arith.constant 0 : i32
    %c0_i32_0 = arith.constant 0 : i32
    %c0_i32_1 = arith.constant 0 : i32
    return %c0_i32, %c0_i32_0 : i32, i32
  }
  func.func @transform_2(%arg0: i32) -> (i32, i32) {
    %c0_i32 = arith.constant 0 : i32
    %c0_i32_0 = arith.constant 0 : i32
    %c0_i32_1 = arith.constant 0 : i32
    return %c0_i32, %c0_i32_0 : i32, i32
  }
  func.func @transform_3(%arg0: i32) -> (i32, i32) {
    %c0_i32 = arith.constant 0 : i32
    %c0_i32_0 = arith.constant 0 : i32
    return %arg0, %c0_i32 : i32, i32
  }
}

</mosaic_0001>

<bundles_post_ra>
// kernel: tpu_custom_call.1
= control target key start
LH: loop header
LB: loop body
LE: loop exit
PB: predicated region body
PF: predicated region fallthrough
CT: control target
= control target key end

     0   :  { %8 = vsyncpa [#allocation3], 0  ;;  %s972_s0 = inlined_call_operand.vmem [shape: f32[256,32], index: 0, kind: input, shape index: {}]   ;;  %s973_s1 = inlined_call_operand.vmem [shape: f32[32,128], index: 1, kind: input, shape index: {}]   ;;  %s974_s2 = inlined_call_operand.vmem [shape: f32[1,128], index: 2, kind: input, shape index: {}]   ;;  %s975_s3 = inlined_call_operand.hbm [shape: f32[256,128], index: 3, kind: output, shape index: {}]  }
   0x1   :  { %10 = vsyncpa [#allocation3 + $0x1], 0  ;;  %s776_s12 = smov 0   ;;  %s778_s13 = smov 0  }
   0x2   :  { %s780_s14 = smov 0   ;;  %s782_s15 = smov 0  }
   0x3 LB: > { %s797_s16 = sadd.s32 4294967295, %s751_s15   ;;  %s550_s17 = sadd.s32 4294967294, %s751_s15   ;;  %s751_s15 = sphi %s782_s15, %s981_s15   ;;  %s747_s14 = sphi %s780_s14, %s980_s14   ;;  %s743_s13 = sphi %s778_s13, %s979_s13   ;;  %s739_s12 = sphi %s776_s12, %s978_s12  }
   0x4   : > { %s801_s18 = sadd.s32 1, %s751_s15   ;;  %s91_s19 = sadd.s32 1, %s747_s14 }
   0x5   : > { %s88_s20 = ssub.s32 %s751_s15, %s801_s18  ;;  %p101_p0 = scmp.ne.s32.totalorder %s747_s14, %s743_s13 }
   0x6   : > { %p89_p1 = scmp.eq.s32.totalorder %s88_s20, 0  ;;  %p102_p2 = scmp.eq.s32.totalorder %s797_s16, 3 }
   0x7   : > { %p107_p3 = scmp.ne.s32.totalorder %s743_s13, %s739_s12  ;;  %p108_p4 = scmp.eq.s32.totalorder %s550_s17, 3 }
   0x8   : > { %s812_s21 = scalar_select %p89_p1, %s747_s14, %s91_s19  }
   0x9   : > { %p814_p5 = por %p102_p2, %p101_p0  ;;  %p818_p6 = por %p108_p4, %p107_p3 }
   0xa   : > { %p553_p7 = scmp.ge.s32.totalorder %s751_s15, 1  ;;  %p141_p8 = scmp.lt.s32.totalorder %s751_s15, 5 }
   0xc   : > { %p142_p9 = pnand %p553_p7, %p141_p8 }
   0xd   : > { %s555_s24 = sshll.u32 (!%p142_p9), %s797_s16, 3  ;;  %vm180_vm0 = vcmask (!%p142_p9), 261120   ;;  %v286_v56 = vld [vmem:[%s973_s1] sm:$0xff] (!%p142_p9)  ;;  %v287_v57 = vld [vmem:[%s973_s1 + $0x8] sm:$0xff] (!%p142_p9)  ;;  %v288_v59 = vld [vmem:[%s973_s1 + $0x10] sm:$0xff] (!%p142_p9)  ;;  %s162_s17 = sand.u32 (!%p142_p9), 1, %s743_s13  }
   0xe   : > { %145 = sbr.rel (%p142_p9) target bundleno = 597 (0x255), region = 32  ;;  %p166_p10 = scmp.lt.s32.totalorder (!%p142_p9), %s555_s24, 31  ;;  %v604_v58 = vpack.c.bf16 (!%p142_p9), %v287_v57, %v286_v56  ;;  %v289_v60 = vld [vmem:[%s973_s1 + $0x18] sm:$0xff] (!%p142_p9) }
   0xf   : > { %v608_v61 = vpack.c.bf16 (!%p142_p9), %v289_v60, %v288_v59  ;;  %s554_s19 = sshll.u32 (!%p142_p9), %s162_s17, 6  ;;  %s753_s30 = smov (!%p142_p9), [#allocation2]  }
  0x10   : > { %605 = vmatprep.subr.bf16.mxu0 (!%p142_p9), %v604_v58  ;;  %612 = vmatprep.subr.bf16.mxu1 (!%p142_p9), %v604_v58  ;;  %s910_s20 = scalar_lea.vmem (!%p142_p9), [#allocation2], %s554_s19  ;;  %s693_s4 = sshll.u32 (!%p142_p9), %s753_s30, 4  ;;  %s694_s4 = int_to_ptr.vmem [resolvable:$false] %s693_s4 }
  0x11   : > { %607 = vmatpush3.bf16.msra.mxu0 (!%p142_p9), %v604_v58  ;;  %614 = vmatpush3.bf16.msra.mxu1 (!%p142_p9), %v604_v58  ;;  %s695_s5 = scalar_lea.vmem (!%p142_p9), %s694_s4, 2048 }
  0x12   : > { %609 = vmatprep.subr.bf16.mxu0 (!%p142_p9), %v608_v61  ;;  %613 = vmatprep.subr.bf16.mxu1 (!%p142_p9), %v608_v61 }
  0x15   : > { %s983_s24 = smov (!%p166_p10, %s555_s24), 31  ;;  %611 = vmatpush3.bf16.msra.mxu0 %v608_v61  ;;  %615 = vmatpush3.bf16.msra.mxu1 %v608_v61 }
  0x16   : > { %s556_s25 = sshll.u32 %s983_s24, 3  ;;  %s571_s24 = sshll.u32 %s797_s16, 10 }
  0x17   : > { %s169_s28 = scalar_lea.vmem %s972_s0, %s556_s25  ;;  %s488_s25 = sshll.u32 %s910_s20, 4  ;;  %s925_s25 = int_to_ptr.vmem [resolvable:$true] %s488_s25 }
  0x18   : > { %v172_v0 = vld [vmem:[%s169_s28] sm:$0xff]  ;;  %v173_v1 = vld [vmem:[%s169_s28 + $0x8] sm:$0xff]  ;;  %v174_v8 = vld [vmem:[%s169_s28 + $0x10] sm:$0xff]  ;;  %s931_s16 = scalar_lea.sflag [#allocation3], %s162_s17  ;;  %s689_s29 = scalar_lea.vmem %s925_s25, 1024 }
  0x19   : > { %v176_v2 = vld [vmem:[%s169_s28 + $0x20] sm:$0xff]  ;;  %v181_v3 = vsel %vm180_vm0, %v172_v0, 0.0  ;;  %v184_v4 = vsel %vm180_vm0, %v173_v1, 0.0  ;;  %v177_v5 = vld [vmem:[%s169_s28 + $0x28] sm:$0xff]  ;;  %v178_v9 = vld [vmem:[%s169_s28 + $0x30] sm:$0xff]  ;;  %v187_v10 = vsel %vm180_vm0, %v174_v8, 0.0  ;;  %p690_p11 = scmp.ne.s32.totalorder %s925_s25, %s689_s29  ;;  %p696_p0 = scmp.lt.s32.totalorder %s925_s25, %s694_s4 }
  0x1a   : > { %182 = vadd.xlane.f32.xlu0 %v181_v3  ;;  %185 = vadd.xlane.f32.xlu1 %v184_v4  ;;  %v193_v6 = vsel %vm180_vm0, %v176_v2, 0.0  ;;  %v196_v7 = vsel %vm180_vm0, %v177_v5, 0.0  ;;  %v199_v11 = vsel %vm180_vm0, %v178_v9, 0.0  ;;  %v175_v12 = vld [vmem:[%s169_s28 + $0x18] sm:$0xff]  ;;  %p697_p1 = scmp.lt.s32.totalorder %s695_s5, %s689_s29 }
  0x1b   : > { %v179_v13 = vld [vmem:[%s169_s28 + $0x38] sm:$0xff]  ;;  %v190_v14 = vsel %vm180_vm0, %v175_v12, 0.0  ;;  %s923_s28 = scalar_lea.hbm %s975_s3, %s571_s24  ;;  %p691_p12 = pnand %p690_p11, %p814_p5 }
  0x1c   : > { %v202_v15 = vsel %vm180_vm0, %v179_v13, 0.0  ;;  %p698_p2 = por %p697_p1, %p696_p0 }
  0x1d   : > { %p692_p13 = pneg %p691_p12 }
  0x1e   : > { %194 = vadd.xlane.f32.xlu0 %v193_v6  ;;  %197 = vadd.xlane.f32.xlu1 %v196_v7 }
  0x1f   : > { %p699_p3 = pnand %p698_p2, %p692_p13 }
  0x22   : > { %188 = vadd.xlane.f32.xlu0 %v187_v10  ;;  %200 = vadd.xlane.f32.xlu1 %v199_v11 }
  0x26   : > { %191 = vadd.xlane.f32.xlu0 %v190_v14  ;;  %203 = vadd.xlane.f32.xlu1 %v202_v15 }
  0xa7   : > { %v183_v16 = vpop.xlane.xlu0 %182  ;;  %v186_v17 = vpop.xlane.xlu1 %185 }
  0xa8   : > { %v206_v18 = vmul.f32 0.03125, %v183_v16  ;;  %v207_v19 = vmul.f32 0.03125, %v186_v17 }
  0xaa   : > { %v836_v20 = vsub.f32 %v172_v0, %v206_v18  ;;  %v838_v21 = vsub.f32 %v173_v1, %v207_v19 }
  0xab   : > { %v195_v22 = vpop.xlane.xlu0 %194  ;;  %v198_v23 = vpop.xlane.xlu1 %197 }
  0xac   : > { %v210_v24 = vmul.f32 0.03125, %v195_v22  ;;  %v211_v25 = vmul.f32 0.03125, %v198_v23  ;;  %v222_v26 = vmul.f32 %v836_v20, %v836_v20  ;;  %v223_v27 = vmul.f32 %v838_v21, %v838_v21 }
  0xae   : > { %v844_v28 = vsub.f32 %v176_v2, %v210_v24  ;;  %v846_v29 = vsub.f32 %v177_v5, %v211_v25  ;;  %v230_v30 = vsel %vm180_vm0, %v222_v26, 0.0  ;;  %v233_v33 = vsel %vm180_vm0, %v223_v27, 0.0 }
  0xaf   : > { %231 = vadd.xlane.f32.xlu0 %v230_v30  ;;  %v189_v31 = vpop.xlane.xlu0 %188  ;;  %v201_v32 = vpop.xlane.xlu1 %200 }
  0xb0   : > { %v208_v34 = vmul.f32 0.03125, %v189_v31  ;;  %v212_v35 = vmul.f32 0.03125, %v201_v32  ;;  %v226_v36 = vmul.f32 %v844_v28, %v844_v28  ;;  %v227_v37 = vmul.f32 %v846_v29, %v846_v29 }
  0xb2   : > { %v854_v38 = vsub.f32 %v174_v8, %v208_v34  ;;  %v856_v39 = vsub.f32 %v178_v9, %v212_v35  ;;  %v242_v40 = vsel %vm180_vm0, %v226_v36, 0.0  ;;  %v245_v43 = vsel %vm180_vm0, %v227_v37, 0.0 }
  0xb3   : > { %234 = vadd.xlane.f32.xlu0 %v233_v33  ;;  %243 = vadd.xlane.f32.xlu1 %v242_v40  ;;  %v192_v41 = vpop.xlane.xlu0 %191  ;;  %v204_v42 = vpop.xlane.xlu1 %203 }
  0xb4   : > { %v209_v44 = vmul.f32 0.03125, %v192_v41  ;;  %v213_v45 = vmul.f32 0.03125, %v204_v42  ;;  %v224_v46 = vmul.f32 %v854_v38, %v854_v38  ;;  %v228_v47 = vmul.f32 %v856_v39, %v856_v39 }
  0xb6   : > { %v864_v48 = vsub.f32 %v175_v12, %v209_v44  ;;  %v866_v49 = vsub.f32 %v179_v13, %v213_v45  ;;  %v236_v50 = vsel %vm180_vm0, %v224_v46, 0.0  ;;  %v248_v51 = vsel %vm180_vm0, %v228_v47, 0.0 }
  0xb7   : > { %246 = vadd.xlane.f32.xlu1 %v245_v43  ;;  %237 = vadd.xlane.f32.xlu0 %v236_v50 }
  0xb8   : > { %v225_v52 = vmul.f32 %v864_v48, %v864_v48  ;;  %v229_v53 = vmul.f32 %v866_v49, %v866_v49 }
  0xba   : > { %v239_v54 = vsel %vm180_vm0, %v225_v52, 0.0  ;;  %v251_v55 = vsel %vm180_vm0, %v229_v53, 0.0 }
  0xbb   : > { %249 = vadd.xlane.f32.xlu1 %v248_v51  ;;  %240 = vadd.xlane.f32.xlu0 %v239_v54 }
  0xbf   : > { %252 = vadd.xlane.f32.xlu1 %v251_v55 }
 0x13c   : > { %v232_v62 = vpop.xlane.xlu0 %231 }
 0x13d   : > { %v254_v63 = vmul.f32 0.03125, %v232_v62 }
 0x13f   : > { %v262_v0 = vadd.f32 1e-05, %v254_v63 }
 0x140   : > { %v244_v1 = vpop.xlane.xlu1 %243  ;;  %v235_v2 = vpop.xlane.xlu0 %234 }
 0x141   : > { %657 = vrsqrt.f32 %v262_v0  ;;  %v258_v3 = vmul.f32 0.03125, %v244_v1  ;;  %v255_v4 = vmul.f32 0.03125, %v235_v2 }
 0x143   : > { %v266_v5 = vadd.f32 1e-05, %v258_v3  ;;  %v263_v6 = vadd.f32 1e-05, %v255_v4 }
 0x144   : > { %v247_v7 = vpop.xlane.xlu1 %246  ;;  %v238_v8 = vpop.xlane.xlu0 %237 }
 0x145   : > { %659 = vrsqrt.f32 %v266_v5  ;;  %v259_v9 = vmul.f32 0.03125, %v247_v7  ;;  %v256_v10 = vmul.f32 0.03125, %v238_v8 }
 0x146   : > { %661 = vrsqrt.f32 %v263_v6 }
 0x147   : > { %v267_v11 = vadd.f32 1e-05, %v259_v9  ;;  %v264_v12 = vadd.f32 1e-05, %v256_v10 }
 0x148   : > { %v250_v13 = vpop.xlane.xlu1 %249  ;;  %v241_v14 = vpop.xlane.xlu0 %240 }
 0x149   : > { %663 = vrsqrt.f32 %v267_v11  ;;  %v260_v15 = vmul.f32 0.03125, %v250_v13  ;;  %v257_v16 = vmul.f32 0.03125, %v241_v14 }
 0x14a   : > { %665 = vrsqrt.f32 %v264_v12 }
 0x14b   : > { %v658_v17 = vpop.eup %657  ;;  %v268_v18 = vadd.f32 1e-05, %v260_v15  ;;  %v265_v19 = vadd.f32 1e-05, %v257_v16 }
 0x14c   : > { %v253_v22 = vpop.xlane.xlu1 %252  ;;  %v278_v23 = vmul.f32 %v658_v17, %v836_v20 }
 0x14d   : > { %667 = vrsqrt.f32 %v268_v18  ;;  %v261_v24 = vmul.f32 0.03125, %v253_v22 }
 0x14e   : > { %669 = vrsqrt.f32 %v265_v19  ;;  %592 = vmatprep.mubr.msk.f32.mxu0 %vm180_vm0, %v278_v23 }
 0x14f   : > { %v660_v25 = vpop.eup %659  ;;  %v269_v26 = vadd.f32 1e-05, %v261_v24 }
 0x150   : > { %v662_v27 = vpop.eup %661  ;;  %v282_v30 = vmul.f32 %v660_v25, %v844_v28 }
 0x151   : > { %671 = vrsqrt.f32 %v269_v26  ;;  %v279_v31 = vmul.f32 %v662_v27, %v838_v21 }
 0x152   : > { %598 = vmatprep.mubr.msk.f32.mxu1 %vm180_vm0, %v282_v30 }
 0x153   : > { %v664_v32 = vpop.eup %663  ;;  %593 = vmatmul.mubr.msk.f32.vlgmr.msra.gmra.mrb[0].mxu0 %vm180_vm0, %v279_v31 }
 0x154   : > { %v666_v33 = vpop.eup %665  ;;  %v283_v20 = vmul.f32 %v664_v32, %v846_v29  ;;  %v557_v29 = vld [vmem:[%s974_s2] ss:$0 sm:$0xff] }
 0x155   : > { %v280_v34 = vmul.f32 %v666_v33, %v854_v38 }
 0x156   : > { %599 = vmatmul.mubr.msk.f32.vlgmr.msra.gmra.mrb[0].mxu1 %vm180_vm0, %v283_v20 }
 0x157   : > { %v668_v35 = vpop.eup %667  ;;  %595 = vmatprep.mubr.msk.f32.mxu0 %vm180_vm0, %v280_v34 }
 0x158   : > { %v670_v36 = vpop.eup %669  ;;  %v284_v28 = vmul.f32 %v668_v35, %v856_v39 }
 0x159   : > { %v281_v21 = vmul.f32 %v670_v36, %v864_v48 }
 0x15a   : > { %601 = vmatprep.mubr.msk.f32.mxu1 %vm180_vm0, %v284_v28 }
 0x15b   : > { %v672_v37 = vpop.eup %671  ;;  %596 = vmatmul.mubr.msk.f32.gmra.mrb[2].mxu0 %vm180_vm0, %v281_v21 }
 0x15c   : > { %v285_v40 = vmul.f32 %v672_v37, %v866_v49 }
 0x15e   : > { %602 = vmatmul.mubr.msk.f32.gmra.mrb[2].mxu1 %vm180_vm0, %v285_v40 }
 0x226   : > { %v594_v38 = vpop.f32.mrb[0].mxu0 }
 0x227   : > { %v393_v41 = vadd.f32 %v594_v38, %v557_v29  ;;  %v387_v42 = vpop.f32.mrb[1].mxu0 }
 0x228   : > { %v388_v43 = vadd.f32 %v557_v29, %v387_v42 }
 0x229   : > { %v435_v39 = vmul.f32 0.70710677, %v393_v41  ;;  %v600_v44 = vpop.f32.mrb[0].mxu1  ;;  %v427_v1 = vmul.f32 0.5, %v393_v41 }
 0x22a   : > { %v434_v45 = vmul.f32 0.70710677, %v388_v43  ;;  %v413_v46 = vadd.f32 %v600_v44, %v557_v29  ;;  %v407_v47 = vpop.f32.mrb[1].mxu1  ;;  %v426_v3 = vmul.f32 0.5, %v388_v43 }
 0x22b   : > { %673 = verf.f32 %v435_v39  ;;  %v408_v48 = vadd.f32 %v557_v29, %v407_v47 }
 0x22c   : > { %675 = verf.f32 %v434_v45  ;;  %v439_v49 = vmul.f32 0.70710677, %v413_v46  ;;  %v431_v9 = vmul.f32 0.5, %v413_v46 }
 0x22d   : > { %v438_v50 = vmul.f32 0.70710677, %v408_v48  ;;  %v430_v11 = vmul.f32 0.5, %v408_v48 }
 0x22e   : > { %677 = verf.f32 %v439_v49  ;;  %v597_v51 = vpop.f32.mrb[2].mxu0 }
 0x22f   : > { %679 = verf.f32 %v438_v50  ;;  %v403_v52 = vadd.f32 %v597_v51, %v557_v29  ;;  %v397_v53 = vpop.f32.mrb[3].mxu0 }
 0x230   : > { %v398_v54 = vadd.f32 %v557_v29, %v397_v53 }
 0x231   : > { %v437_v55 = vmul.f32 0.70710677, %v403_v52  ;;  %v603_v56 = vpop.f32.mrb[2].mxu1  ;;  %v429_v17 = vmul.f32 0.5, %v403_v52 }
 0x232   : > { %v436_v57 = vmul.f32 0.70710677, %v398_v54  ;;  %v423_v58 = vadd.f32 %v603_v56, %v557_v29  ;;  %v417_v59 = vpop.f32.mrb[3].mxu1  ;;  %v428_v19 = vmul.f32 0.5, %v398_v54 }
 0x233   : > { %681 = verf.f32 %v437_v55  ;;  %v418_v60 = vadd.f32 %v557_v29, %v417_v59 }
 0x234   : > { %683 = verf.f32 %v436_v57  ;;  %v441_v61 = vmul.f32 0.70710677, %v423_v58  ;;  %v433_v27 = vmul.f32 0.5, %v423_v58 }
 0x235   : > { %v674_v62 = vpop.eup %673  ;;  %v440_v63 = vmul.f32 0.70710677, %v418_v60  ;;  %v432_v31 = vmul.f32 0.5, %v418_v60 }
 0x236   : > { %v676_v0 = vpop.eup %675  ;;  %v451_v2 = vadd.f32 1.0, %v674_v62  ;;  %685 = verf.f32 %v441_v61 }
 0x237   : > { %v450_v4 = vadd.f32 1.0, %v676_v0  ;;  %687 = verf.f32 %v440_v63 }
 0x238   : > { %v678_v5 = vpop.eup %677  ;;  %v459_v6 = vmul.f32 %v451_v2, %v427_v1 }
 0x239   : > { %v680_v7 = vpop.eup %679  ;;  %v458_v8 = vmul.f32 %v450_v4, %v426_v3  ;;  %v455_v10 = vadd.f32 1.0, %v678_v5 }
 0x23a   : > { %467 = vst [vmem:[%s910_s20 + $0x8] sm:$0xff] %v459_v6  ;;  %v454_v12 = vadd.f32 1.0, %v680_v7 }
 0x23b   : > { %466 = vst [vmem:[%s910_s20] sm:$0xff] %v458_v8  ;;  %v463_v13 = vmul.f32 %v455_v10, %v431_v9 }
 0x23c   : > { %v462_v14 = vmul.f32 %v454_v12, %v430_v11 }
 0x23d   : > { %v682_v15 = vpop.eup %681  ;;  %471 = vst [vmem:[%s910_s20 + $0x28] sm:$0xff] %v463_v13 }
 0x23e   : > { %v684_v16 = vpop.eup %683  ;;  %470 = vst [vmem:[%s910_s20 + $0x20] sm:$0xff] %v462_v14  ;;  %v453_v18 = vadd.f32 1.0, %v682_v15 }
 0x23f   : > { %v452_v22 = vadd.f32 1.0, %v684_v16 }
 0x240   : > { %v686_v23 = vpop.eup %685  ;;  %v461_v24 = vmul.f32 %v453_v18, %v429_v17 }
 0x241   : > { %v688_v25 = vpop.eup %687  ;;  %v460_v26 = vmul.f32 %v452_v22, %v428_v19  ;;  %v457_v30 = vadd.f32 1.0, %v686_v23 }
 0x242   : > { %469 = vst [vmem:[%s910_s20 + $0x18] sm:$0xff] %v461_v24  ;;  %v456_v32 = vadd.f32 1.0, %v688_v25 }
 0x243   : > { %468 = vst [vmem:[%s910_s20 + $0x10] sm:$0xff] %v460_v26  ;;  %v465_v33 = vmul.f32 %v457_v30, %v433_v27 }
 0x244   : > { %v464_v20 = vmul.f32 %v456_v32, %v432_v31 }
 0x245   : > { %473 = vst [vmem:[%s910_s20 + $0x38] sm:$0xff] %v465_v33 }
 0x246   : > { %472 = vst [vmem:[%s910_s20 + $0x30] sm:$0xff] %v464_v20 }
 0x247   : > { %702 = shalt.err (!%p699_p3)
}
 0x248   : > { %s703_s6 = scalar_lea.hbm %s923_s28, 1024  ;;  %s707_s9 = scalar_lea.hbm %s975_s3, 4096 }
 0x249   : > { %p704_p4 = scmp.ne.s32.totalorder %s923_s28, %s703_s6  ;;  %p708_p9 = scmp.lt.u32.totalorder %s923_s28, %s975_s3 }
 0x24a   : > { %p709_p10 = scmp.lt.u32.totalorder %s707_s9, %s703_s6  ;;  %p711_p12 = scmp.lt.u32.totalorder %s703_s6, %s923_s28 }
 0x24b   : > { %p705_p7 = pnand %p704_p4, %p814_p5 }
 0x24c   : > { %p710_p11 = por %p709_p10, %p708_p9 }
 0x24d   : > { %p706_p8 = pneg %p705_p7 }
 0x24e   : > { %p712_p13 = por %p711_p12, %p710_p11 }
 0x250   : > { %p713_p0 = pnand %p712_p13, %p706_p8 }
 0x252   : > { %716 = shalt.err (!%p713_p0)
}
 0x253   : > { %s754_s17 = smov 128   ;;  %s755_s19 = smov 8  }
 0x254   : > { %616 = dma.vmem_to_hbm [thread:$0]  (%p814_p5), %s925_s25, 1024, %s923_s28, %s931_s16, %s754_s17, %s754_s17, %s755_s19  }
 0x255 PF: > { %p622_p1 = scmp.ge.s32.totalorder %s751_s15, 2  ;;  %s503_s20 = sand.u32 1, %s739_s12  }
 0x256   : > { %s504_s24 = scalar_lea.sflag [#allocation3], %s503_s20 }
 0x257   : > { %p619_p2 = pnand %p622_p1, %p818_p6 }
 0x259   : > { %734 = dma.done.wait (!%p619_p2), %s504_s24, 1024  }
 0x25a   : > { %736 = vsyncadd (!%p619_p2), %s504_s24, 4294966272  ;;  %p13_p3 = scmp.ge.s32.totalorder %s801_s18, 6   ;;  %s978_s12 = smov %s743_s13 }
 0x25b   : > { %s979_s13 = smov %s747_s14  ;;  %s980_s14 = smov %s812_s21 }
 0x25c   : > { %s981_s15 = smov %s801_s18  ;;  %15 = sbr.rel (!%p13_p3) target bundleno = 3 (0x3), region = 67 }
 0x263   :  { %509 = vsyncpa [#allocation3], 1 }
 0x264   :  { %511 = vsyncpa [#allocation3 + $0x1], 1 }

</bundles_post_ra>
